<compile_context>
chip_gen: v7x
topology: tpu7x:2x2x1
jax: 0.10.0
libtpu: 0.0.40
codegen_flags: <defaults>
</compile_context>

<pallas_src>
import functools

import jax
import jax.numpy as jnp
from jax.experimental import pallas as pl
from jax.experimental.pallas import tpu as pltpu


def _hcnn_seq_kernel(*refs, n_features_Y: int, has_obs: bool):
    if has_obs:
        (known_ref, obs_ref, aT_ref, state0_ref,
         state_out_ref, out_ref, state_scr) = refs
    else:
        (known_ref, aT_ref, state0_ref,
         state_out_ref, out_ref, state_scr) = refs
        obs_ref = None

    t = pl.program_id(0)
    Y = n_features_Y

    # Initialize the carried state on the first grid step.
    @pl.when(t == 0)
    def _():
        state_scr[...] = state0_ref[...].astype(state_scr.dtype)

    state = state_scr[...]              # (B, S)  f32, resident in VMEM
    known = known_ref[0]                # (B, U)  current timestep

    # expectation = state @ eye(Y, S).T  ==  state[:, :Y]   (no MXU needed)
    expectation = state[:, :Y]          # (B, Y)

    if has_obs:
        obs = obs_ref[0]                # (B, Y)
        output = expectation - obs
        # s2r + k2r - tf  collapses to  [obs | state[:, Y:] | known]
        rstate = jnp.concatenate([obs, state[:, Y:], known], axis=1)   # (B, S+U)
    else:
        output = expectation
        rstate = jnp.concatenate([state, known], axis=1)               # (B, S+U)

    rstate = jnp.tanh(rstate)

    # The single real matmul: new_state = rstate @ A.T   -> (B, S)
    new_state = jnp.dot(rstate, aT_ref[...], preferred_element_type=jnp.float32)

    state_scr[...] = new_state
    out_ref[t] = output.astype(out_ref.dtype)

    @pl.when(t == pl.num_programs(0) - 1)
    def _():
        state_out_ref[...] = new_state.astype(state_out_ref.dtype)


def hcnn_known_u_sequence(state0, known_seq, observation_seq, A_T, n_features_Y):
    """Fused T-step HCNN_KNOWN_U recurrence.

    state0:          (B, S)
    known_seq:       (T, B, U)
    observation_seq: (T, B, Y) or None
    A_T:             (S+U, S)   (A.weight.T, so the kernel does rstate @ A_T)

    Returns (final_state (B, S), outputs (T, B, Y)).
    """
    T, B, U = known_seq.shape
    S = state0.shape[1]
    Y = n_features_Y
    has_obs = observation_seq is not None

    kernel = functools.partial(_hcnn_seq_kernel, n_features_Y=Y, has_obs=has_obs)

    in_specs = [pl.BlockSpec((1, B, U), lambda t: (t, 0, 0))]   # known, per-step tile
    inputs = [known_seq]
    if has_obs:
        in_specs.append(pl.BlockSpec((1, B, Y), lambda t: (t, 0, 0)))  # obs, per-step
        inputs.append(observation_seq)
    in_specs += [
        pl.BlockSpec((S + U, S), lambda t: (0, 0)),   # A_T: loaded once, resident
        pl.BlockSpec((B, S), lambda t: (0, 0)),       # initial state: loaded once
    ]
    inputs += [A_T, state0]

    out_shape = (jax.ShapeDtypeStruct((B, S), state0.dtype),      # final state
                 jax.ShapeDtypeStruct((T, B, Y), state0.dtype))   # per-step outputs
    out_specs = (
        pl.BlockSpec((B, S), lambda t: (0, 0)),          # resident, written at end
        pl.BlockSpec((T, B, Y), lambda t: (0, 0, 0)),    # resident slab, one writeback
    )

    state_final, outputs = pl.pallas_call(
        kernel,
        grid=(T,),
        in_specs=in_specs,
        out_specs=out_specs,
        out_shape=out_shape,
        scratch_shapes=[pltpu.VMEM((B, S), jnp.float32)],   # carried state
        compiler_params=pltpu.CompilerParams(
            dimension_semantics=("arbitrary",)),            # sequential recurrence
    )(*inputs)
    return state_final, outputs


def hcnn_known_u_cell(state, known_features, observation, A_T, n_features_Y):
    """One forecast step (matches the PyTorch module's forward)."""
    known_seq = known_features[None]
    obs_seq = None if observation is None else observation[None]
    new_state, outputs = hcnn_known_u_sequence(
        state, known_seq, obs_seq, A_T, n_features_Y)
    return new_state, outputs[0]


def init_A_T(key, n_state_neurons, n_features_U, dtype=jnp.float32):
    """nn.Linear(S+U -> S, bias=False) default init, stored transposed."""
    S, U = n_state_neurons, n_features_U
    bound = 1.0 / float(S + U) ** 0.5
    A = jax.random.uniform(key, (S, S + U), dtype=dtype, minval=-bound, maxval=bound)
    return A.T                                   # (S+U, S)


# ---------------------------------------------------------------------------
# Pure-JAX references mirroring the PyTorch forward (with the eye matmuls),
# used to validate the algebraic rewrite in the kernel.
# ---------------------------------------------------------------------------
def _reference_step(state, known, observation, A_T, n_features_Y):
    S = state.shape[1]
    U = known.shape[1]
    Y = n_features_Y
    eye = jnp.eye(Y, S, dtype=state.dtype)
    eye_err2r = jnp.eye(Y, S + U, dtype=state.dtype)
    eye_s2r = jnp.eye(S, S + U, dtype=state.dtype)
    eye_u2r = jnp.concatenate(
        [jnp.zeros((U, S), dtype=state.dtype), jnp.eye(U, dtype=state.dtype)], axis=1)

    expectation = state @ eye.T
    if observation is not None:
        output = expectation - observation
        tf = output @ eye_err2r
        rstate = jnp.tanh(state @ eye_s2r + known @ eye_u2r - tf)
    else:
        output = expectation
        rstate = jnp.tanh(state @ eye_s2r + known @ eye_u2r)
    new_state = rstate @ A_T
    return new_state, output


def _reference_sequence(state0, known_seq, obs_seq, A_T, n_features_Y):
    state = state0
    outs = []
    for t in range(known_seq.shape[0]):
        obs_t = None if obs_seq is None else obs_seq[t]
        state, out = _reference_step(state, known_seq[t], obs_t, A_T, n_features_Y)
        outs.append(out)
    return state, jnp.stack(outs, axis=0)


if __name__ == "__main__":
    B, S, U, Y, T = 8, 32, 8, 4, 16   # batch, state, known-U, features-Y, timesteps

    key = jax.random.PRNGKey(0)
    k_a, k_s, k_u, k_y = jax.random.split(key, 4)

    A_T = init_A_T(k_a, S, U)
    state0 = jax.random.normal(k_s, (B, S), dtype=jnp.float32)
    known_seq = jax.random.normal(k_u, (T, B, U), dtype=jnp.float32)
    obs_seq = jax.random.normal(k_y, (T, B, Y), dtype=jnp.float32)

    # --- single cell step, with observation ---
    ns, out = hcnn_known_u_cell(state0, known_seq[0], obs_seq[0], A_T, Y)
    jax.block_until_ready((ns, out))
    rns, rout = _reference_step(state0, known_seq[0], obs_seq[0], A_T, Y)
    assert jnp.allclose(ns, rns, atol=1e-4), "state mismatch (cell, obs)"
    assert jnp.allclose(out, rout, atol=1e-4), "output mismatch (cell, obs)"

    # --- single cell step, without observation ---
    ns2, out2 = hcnn_known_u_cell(state0, known_seq[0], None, A_T, Y)
    jax.block_until_ready((ns2, out2))
    rns2, rout2 = _reference_step(state0, known_seq[0], None, A_T, Y)
    assert jnp.allclose(ns2, rns2, atol=1e-4), "state mismatch (cell, no obs)"
    assert jnp.allclose(out2, rout2, atol=1e-4), "output mismatch (cell, no obs)"

    # --- fused T-step recurrence, with observations ---
    fs, outs = hcnn_known_u_sequence(state0, known_seq, obs_seq, A_T, Y)
    jax.block_until_ready((fs, outs))
    rfs, routs = _reference_sequence(state0, known_seq, obs_seq, A_T, Y)
    assert jnp.allclose(fs, rfs, atol=1e-4), "state mismatch (seq, obs)"
    assert jnp.allclose(outs, routs, atol=1e-4), "output mismatch (seq, obs)"

    # --- fused T-step recurrence, without observations ---
    fs2, outs2 = hcnn_known_u_sequence(state0, known_seq, None, A_T, Y)
    jax.block_until_ready((fs2, outs2))
    rfs2, routs2 = _reference_sequence(state0, known_seq, None, A_T, Y)
    assert jnp.allclose(fs2, rfs2, atol=1e-4), "state mismatch (seq, no obs)"
    assert jnp.allclose(outs2, routs2, atol=1e-4), "output mismatch (seq, no obs)"

    print("KERNEL_OK")
</pallas_src>

<mosaic_0001>
module attributes {stable_mosaic.version = 11 : i64} {
  func.func @_hcnn_seq_kernel(%arg0: i32, %arg1: memref<1x8x8xf32, #tpu.memory_space<vmem>>, %arg2: memref<1x8x4xf32, #tpu.memory_space<vmem>>, %arg3: memref<40x32xf32, #tpu.memory_space<vmem>>, %arg4: memref<8x32xf32, #tpu.memory_space<vmem>>, %arg5: memref<8x32xf32, #tpu.memory_space<vmem>>, %arg6: memref<1x8x4xf32, #tpu.memory_space<vmem>>, %arg7: memref<8x32xf32, #tpu.memory_space<vmem>>) attributes {dimension_semantics = [#tpu.dimension_semantics<arbitrary>], iteration_bounds = array<i64: 1>, scalar_prefetch = 0 : i64, scratch_operands = 1 : i64, tpu.core_type = #tpu.core_type<tc>, window_params = [{transform_indices = @transform_0, window_bounds = array<i64: 1, 8, 8>}, {transform_indices = @transform_1, window_bounds = array<i64: 1, 8, 4>}, {pipeline_mode = #tpu.pipeline_mode<synchronous>, transform_indices = @transform_2, window_bounds = array<i64: 40, 32>}, {pipeline_mode = #tpu.pipeline_mode<synchronous>, transform_indices = @transform_3, window_bounds = array<i64: 8, 32>}, {pipeline_mode = #tpu.pipeline_mode<synchronous>, transform_indices = @transform_4, window_bounds = array<i64: 8, 32>}, {pipeline_mode = #tpu.pipeline_mode<synchronous>, transform_indices = @transform_5, window_bounds = array<i64: 1, 8, 4>}]} {
    %c0_i32 = arith.constant 0 : i32
    %0 = arith.cmpi eq, %arg0, %c0_i32 : i32
    %1 = arith.extui %0 : i1 to i32
    %c0_i32_0 = arith.constant 0 : i32
    %2 = arith.cmpi ne, %1, %c0_i32_0 : i32
    scf.if %2 {
      %c0_16 = arith.constant 0 : index
      %c0_17 = arith.constant 0 : index
      %23 = vector.load %arg4[%c0_16, %c0_17] : memref<8x32xf32, #tpu.memory_space<vmem>>, vector<8x32xf32>
      %c0_18 = arith.constant 0 : index
      %c0_19 = arith.constant 0 : index
      %24 = vector.load %arg7[%c0_18, %c0_19] : memref<8x32xf32, #tpu.memory_space<vmem>>, vector<8x32xf32>
      tpu.vector_store %arg7[%c0_18, %c0_19], %23 {strides = array<i32>} : memref<8x32xf32, #tpu.memory_space<vmem>>, vector<8x32xf32>,
    } else {
    }
    %c0 = arith.constant 0 : index
    %c0_1 = arith.constant 0 : index
    %3 = vector.load %arg7[%c0, %c0_1] : memref<8x32xf32, #tpu.memory_space<vmem>>, vector<8x32xf32>
    %c0_2 = arith.constant 0 : index
    %c0_3 = arith.constant 0 : index
    %c0_4 = arith.constant 0 : index
    %4 = vector.load %arg1[%c0_2, %c0_3, %c0_4] : memref<1x8x8xf32, #tpu.memory_space<vmem>>, vector<1x8x8xf32>
    %5 = vector.shape_cast %4 : vector<1x8x8xf32> to vector<8x8xf32>
    %6 = vector.extract_strided_slice %3 {offsets = [0, 0], sizes = [8, 4], strides = [1, 1]} : vector<8x32xf32> to vector<8x4xf32>
    %c0_5 = arith.constant 0 : index
    %c0_6 = arith.constant 0 : index
    %c0_7 = arith.constant 0 : index
    %7 = vector.load %arg2[%c0_5, %c0_6, %c0_7] : memref<1x8x4xf32, #tpu.memory_space<vmem>>, vector<1x8x4xf32>
    %8 = vector.shape_cast %7 : vector<1x8x4xf32> to vector<8x4xf32>
    %9 = arith.subf %6, %8 : vector<8x4xf32>
    %10 = vector.extract_strided_slice %3 {offsets = [0, 4], sizes = [8, 28], strides = [1, 1]} : vector<8x32xf32> to vector<8x28xf32>
    %11 = tpu.concatenate %8, %10, %5 in 1 : vector<8x4xf32>, vector<8x28xf32>, vector<8x8xf32> -> vector<8x40xf32>
    %12 = math.tanh %11 : vector<8x40xf32>
    %c0_8 = arith.constant 0 : index
    %c0_9 = arith.constant 0 : index
    %13 = vector.load %arg3[%c0_8, %c0_9] : memref<40x32xf32, #tpu.memory_space<vmem>>, vector<40x32xf32>
    %cst = arith.constant dense<0.000000e+00> : vector<8x32xf32>
    %14 = tpu.matmul %12, %13, %cst {dimension_numbers = #tpu.dot_dimension_numbers<[1], [0], [0], [1], [0, 0, 1, 1], [], []>} : vector<8x40xf32>, vector<40x32xf32>, vector<8x32xf32> -> vector<8x32xf32>
    %c0_10 = arith.constant 0 : index
    %c0_11 = arith.constant 0 : index
    %15 = vector.load %arg7[%c0_10, %c0_11] : memref<8x32xf32, #tpu.memory_space<vmem>>, vector<8x32xf32>
    tpu.vector_store %arg7[%c0_10, %c0_11], %14 {strides = array<i32>} : memref<8x32xf32, #tpu.memory_space<vmem>>, vector<8x32xf32>,
    %16 = arith.index_cast %arg0 : i32 to index
    %c0_12 = arith.constant 0 : index
    %c0_13 = arith.constant 0 : index
    %17 = vector.load %arg6[%16, %c0_12, %c0_13] : memref<1x8x4xf32, #tpu.memory_space<vmem>>, vector<1x8x4xf32>
    %18 = vector.shape_cast %17 : vector<1x8x4xf32> to vector<8x4xf32>
    %19 = vector.shape_cast %9 : vector<8x4xf32> to vector<1x8x4xf32>
    tpu.vector_store %arg6[%16, %c0_12, %c0_13], %19 {strides = array<i32>} : memref<1x8x4xf32, #tpu.memory_space<vmem>>, vector<1x8x4xf32>,
    %c0_i32_14 = arith.constant 0 : i32
    %20 = arith.cmpi eq, %arg0, %c0_i32_14 : i32
    %21 = arith.extui %20 : i1 to i32
    %c0_i32_15 = arith.constant 0 : i32
    %22 = arith.cmpi ne, %21, %c0_i32_15 : i32
    scf.if %22 {
      %c0_16 = arith.constant 0 : index
      %c0_17 = arith.constant 0 : index
      %23 = vector.load %arg5[%c0_16, %c0_17] : memref<8x32xf32, #tpu.memory_space<vmem>>, vector<8x32xf32>
      tpu.vector_store %arg5[%c0_16, %c0_17], %14 {strides = array<i32>} : memref<8x32xf32, #tpu.memory_space<vmem>>, vector<8x32xf32>,
    } else {
    }
    return
  }
  func.func @transform_0(%arg0: i32) -> (i32, i32, i32) {
    %c0_i32 = arith.constant 0 : i32
    %c0_i32_0 = arith.constant 0 : i32
    %c0_i32_1 = arith.constant 0 : i32
    return %arg0, %c0_i32, %c0_i32_0 : i32, i32, i32
  }
  func.func @transform_1(%arg0: i32) -> (i32, i32, i32) {
    %c0_i32 = arith.constant 0 : i32
    %c0_i32_0 = arith.constant 0 : i32
    %c0_i32_1 = arith.constant 0 : i32
    return %arg0, %c0_i32, %c0_i32_0 : i32, i32, i32
  }
  func.func @transform_2(%arg0: i32) -> (i32, i32) {
    %c0_i32 = arith.constant 0 : i32
    %c0_i32_0 = arith.constant 0 : i32
    %c0_i32_1 = arith.constant 0 : i32
    return %c0_i32, %c0_i32_0 : i32, i32
  }
  func.func @transform_3(%arg0: i32) -> (i32, i32) {
    %c0_i32 = arith.constant 0 : i32
    %c0_i32_0 = arith.constant 0 : i32
    %c0_i32_1 = arith.constant 0 : i32
    return %c0_i32, %c0_i32_0 : i32, i32
  }
  func.func @transform_4(%arg0: i32) -> (i32, i32) {
    %c0_i32 = arith.constant 0 : i32
    %c0_i32_0 = arith.constant 0 : i32
    %c0_i32_1 = arith.constant 0 : i32
    return %c0_i32, %c0_i32_0 : i32, i32
  }
  func.func @transform_5(%arg0: i32) -> (i32, i32, i32) {
    %c0_i32 = arith.constant 0 : i32
    %c0_i32_0 = arith.constant 0 : i32
    %c0_i32_1 = arith.constant 0 : i32
    %c0_i32_2 = arith.constant 0 : i32
    return %c0_i32, %c0_i32_0, %c0_i32_1 : i32, i32, i32
  }
}

</mosaic_0001>

<bundles_post_ra>
// kernel: tpu_custom_call.1
= control target key start
LH: loop header
LB: loop body
LE: loop exit
PB: predicated region body
PF: predicated region fallthrough
CT: control target
= control target key end

     0   :  { %vm25_vm0 = vcmask 261120   ;;  %s202_s22 = smov 32   ;;  %v203_v5 = vmov 0.0|0.0   ;;  %vm204_vm1 = vmmov 0   ;;  %v205_v8 = vmov 0.0   ;;  %s280_s0 = inlined_call_operand.vmem [shape: f32[1,8,8], index: 0, kind: input, shape index: {}]   ;;  %s281_s1 = inlined_call_operand.vmem [shape: f32[1,8,4], index: 1, kind: input, shape index: {}]   ;;  %s282_s2 = inlined_call_operand.vmem [shape: f32[40,32], index: 2, kind: input, shape index: {}]   ;;  %s283_s3 = inlined_call_operand.vmem [shape: f32[8,32], index: 3, kind: input, shape index: {}]   ;;  %s284_s4 = inlined_call_operand.hbm [shape: f32[8,32], index: 4, kind: output, shape index: {0}]   ;;  %s285_s5 = inlined_call_operand.vmem [shape: f32[1,8,4], index: 5, kind: output, shape index: {1}]  }
   0x1   :  { %v28_v0 = vld [vmem:[%s280_s0] sm:$0xff]  ;;  %v41_v3 = vld [vmem:[%s282_s2 + $0x8] sm:$0xff]  ;;  %v42_v4 = vld [vmem:[%s282_s2 + $0x10] sm:$0xff]  ;;  %165 = vmatprep.subr.bf16.mxu0 %v203_v5  ;;  %162 = vmatprep.mubr.msk.f32.mxu0 %vm204_vm1, %v205_v8 }
   0x2   :  { %v24_v1 = vld [vmem:[%s283_s3] sm:$0xff]  ;;  %32 = vrot.lane.b32.xlu0 %v28_v0, %s202_s22  ;;  %v43_v7 = vld [vmem:[%s282_s2 + $0x18] sm:$0xff] }
   0x3   :  { %26 = vst.msk [vmem:[#allocation2] sm:$0xff] %vm25_vm0, %v24_v1  ;;  %v40_v2 = vld [vmem:[%s282_s2] sm:$0xff] }
   0x4   :  { %v166_v6 = vpack.c.bf16 %v41_v3, %v40_v2 }
   0x5   :  { %11 = vsyncpa [#allocation4], 0  ;;  %v169_v9 = vpack.c.bf16 %v43_v7, %v42_v4  ;;  %v29_v10 = vld [vmem:[%s281_s1] sm:$0xff]  ;;  %vm35_vm2 = vcmask 31744   ;;  %vm45_vm3 = vcmask 326656   ;;  %s206_s1 = smov [#allocation3]  }
   0x6   :  { %167 = vmatpush3.bf16.msra.mxu0 %v166_v6  ;;  %v44_v14 = vld [vmem:[%s282_s2 + $0x20] sm:$0xff]  ;;  %s133_s10 = sshll.u32 %s206_s1, 4  ;;  %s134_s10 = int_to_ptr.vmem [resolvable:$true] %s133_s10 }
   0x7   :  { %168 = vmatprep.subr.bf16.mxu0 %v203_v5  ;;  %s178_s2 = scalar_lea.vmem %s134_s10, 128  ;;  %p183_p1 = scmp.lt.s32.totalorder %s134_s10, %s134_s10 }
   0x8   :  { %p179_p0 = scmp.ne.s32.totalorder %s134_s10, %s178_s2  ;;  %p184_p2 = scmp.lt.s32.totalorder %s178_s2, %s178_s2 }
   0xa   :  { %v27_v11 = vld [vmem:[#allocation2] sm:$0xff]  ;;  %170 = vmatpush3.bf16.msra.mxu0 %v169_v9  ;;  %p185_p3 = por %p184_p2, %p183_p1 }
   0xb   :  { %v30_v12 = vsub.f32 %v27_v11, %v29_v10  ;;  %v36_v13 = vsel %vm35_vm2, %v29_v10, %v27_v11  ;;  %160 = vmatprep.subr.mxu0 %v205_v8 }
   0xc   :  { %p186_p4 = pnand %p185_p3, %p179_p0 }
   0xd   :  { %122 = vst.msk [vmem:[%s285_s5] sm:$0xff] %vm35_vm2, %v30_v12 }
   0xe   :  { %161 = vmatpush3.msra.mxu0 %v44_v14 }
  0x74   :  { %v33_v15 = vpop.permute.xlu0 %32 }
  0x75   :  { %v38_v16 = vsel %vm25_vm0, %v36_v13, %v33_v15 }
  0x76   :  { %176 = vtanh.f32 %v38_v16 }
  0x80   :  { %v177_v17 = vpop.eup %176 }
  0x81   :  { %163 = vmatmul.mubr.msk.f32.vlgmr.msra.gmra.mrb[0].mxu0 %vm45_vm3, %v177_v17 }
 0x154   :  { %v115_v18 = vpop.f32.mrb[0].mxu0 }
 0x155   :  { %119 = vst.msk [vmem:[#allocation2] sm:$0xff] %vm25_vm0, %v115_v18  ;;  %126 = vst.msk [vmem:[#allocation3] sm:$0xff] %vm25_vm0, %v115_v18  ;;  %v164_v19 = vpop.f32.mrb[1].mxu0 }
 0x156   :  { %189 = shalt.err (!%p186_p4)
}
 0x157   :  { %s190_s12 = scalar_lea.hbm %s284_s4, 128 }
 0x158   :  { %p191_p5 = scmp.ne.s32.totalorder %s284_s4, %s190_s12  ;;  %p194_p6 = scmp.lt.u32.totalorder %s190_s12, %s284_s4 }
 0x15a   :  { %p196_p7 = pnand %p194_p6, %p191_p5 }
 0x15c   :  { %199 = shalt.err (!%p196_p7)
}
 0x15d   :  { %136 = dma.vmem_to_hbm [thread:$0]  %s134_s10, 128, %s284_s4, [#allocation4]  }
 0x15e   :  { %200 = dma.done.wait [#allocation4], 128  }
 0x15f   :  { %201 = vsyncadd [#allocation4], 4294967168 }
 0x160   :  { %144 = vsyncpa [#allocation4], 1 }

</bundles_post_ra>
